<compile_context>
chip_gen: v5e
topology: v5e:2x2
jax: 0.10.0
libtpu: 0.0.40
codegen_flags: <defaults>
</compile_context>

<pallas_src>
import math
import functools

import numpy as np
import jax
import jax.numpy as jnp
from jax import lax
from jax.experimental import pallas as pl
from jax.experimental.pallas import tpu as pltpu


_LN_EPS = 1e-6                       # module uses partial(nn.LayerNorm, eps=1e-06)


# ---------------------------------------------------------------------------
# Generation-aware budgets / tile helpers
# ---------------------------------------------------------------------------
def _round_up(a, m):
    return ((a + m - 1) // m) * m


def _device_budgets():
    """VMEM budgets per generation (v5e/v6e: 128 MiB, v7x: 64 MiB per TC)."""
    try:
        cap = int(pltpu.get_tpu_info().vmem_capacity_bytes)
    except Exception:
        cap = 64 * 1024 * 1024       # conservative fallback = v7x per-TC VMEM
    vmem_limit = (3 * cap) // 4      # 48 MiB on v7x, 96 MiB on v5e/v6e
    x_budget = cap // 8              # attention x tile budget (incl. double buffering)
    w_budget = cap // 4              # fc1+fc2 weight tiles budget (double-buffered)
    row_budget = cap // 16           # MLP per-row-block budget
    return vmem_limit, x_budget, w_budget, row_budget


def _row_tile(b_pad, per_row_bytes, budget, want_two_steps):
    """Largest multiple-of-8 divisor of b_pad fitting `budget`; if `want_two_steps`,
    prefer tiles that give >=2 grid steps (keeps both v7x TensorCores busy)."""
    cands = [d for d in range(8, b_pad + 1, 8) if b_pad % d == 0] or [b_pad]
    fit = [d for d in cands if d * per_row_bytes <= budget] or [cands[0]]
    if want_two_steps:
        two = [d for d in fit if b_pad // d >= 2]
        if two:
            fit = two
    return max(fit)


def _hidden_tile(d_in, hid, w_itemsize, budget):
    """Hidden-dim tile: full extent if the (double-buffered) fc1+fc2 tiles fit VMEM
    (weights then DMA'd once and stay resident); else the largest 256-aligned divisor
    (fills the 256x256 MXU on v6e/v7x); else 128-aligned."""
    def fits(t):
        return 2 * 2 * d_in * t * w_itemsize <= budget
    if fits(hid):
        return hid
    for align in (256, 128):
        c = [t for t in range(align, hid + 1, align) if hid % t == 0 and fits(t)]
        if c:
            return max(c)
    for align in (128, 8):
        c = [t for t in range(align, hid, align) if hid % t == 0]
        if c:
            return min(c)
    return hid


# ---------------------------------------------------------------------------
# Kernel 1: cross-attention, TB batch rows per grid step, dense 2-D outputs.
# ---------------------------------------------------------------------------
def _attention_kernel(q_ref, x_ref, o_ref, scores_ref, *, scale):
    # x: (TB, N, D); q: (1, D). attn_norm / q / k / v projections are Identity.
    xf = x_ref[...].astype(jnp.float32)
    qf = q_ref[...].astype(jnp.float32)              # (1, D) broadcasts over (TB, N, D)

    # q @ k^T as VPU broadcast-multiply + lane reduction over D (no TB tiny MXU pushes).
    s = jnp.sum(xf * qf, axis=-1)                    # (TB, N) f32
    scores_ref[...] = s.astype(scores_ref.dtype)     # scores = attn.sum((H, M)); H=M=1

    # Numerically stable softmax over keys; exact divide (negligible cost at (TB, N)).
    z = s * scale
    z = z - jnp.max(z, axis=-1, keepdims=True)
    e = jnp.exp(z)
    p = e / jnp.sum(e, axis=-1, keepdims=True)       # (TB, N)

    # P @ V (v == x): weighted reduction over keys -> dense (TB, D) lane-major output.
    o = jnp.sum(p[:, :, None] * xf, axis=1)          # (TB, D) f32
    o_ref[...] = o.astype(o_ref.dtype)


# ---------------------------------------------------------------------------
# Kernel 2: residual MLP, hidden dim tiled on grid axis 1 (full extent when it fits).
#   out = o + fc2(gelu(fc1(LayerNorm(o))))
# ---------------------------------------------------------------------------
def _mlp_kernel(o_ref, gamma_ref, beta_ref, fc1_w_ref, fc1_b_ref,
                fc2_w_ref, fc2_b_ref, out_ref, acc_ref, y_ref, *, eps):
    j = pl.program_id(1)

    @pl.when(j == 0)
    def _init():
        o = o_ref[...].astype(jnp.float32)
        mu = jnp.mean(o, axis=-1, keepdims=True)
        var = jnp.mean((o - mu) ** 2, axis=-1, keepdims=True)   # biased var, as torch LN
        y = (o - mu) * lax.rsqrt(var + eps) * gamma_ref[...] + beta_ref[...]
        y_ref[...] = y.astype(y_ref.dtype)           # stored in weight dtype -> native MXU path
        acc_ref[...] = jnp.zeros_like(acc_ref)

    # fc1 slice -> exact GELU (erf; nn.GELU default) -> fc2 slice, f32 accumulation.
    h = jnp.dot(y_ref[...], fc1_w_ref[...],
                preferred_element_type=jnp.float32) + fc1_b_ref[...]
    h = 0.5 * h * (1.0 + lax.erf(h * (1.0 / math.sqrt(2.0))))
    acc_ref[...] += jnp.dot(h.astype(fc2_w_ref.dtype), fc2_w_ref[...],
                            preferred_element_type=jnp.float32)

    @pl.when(j == pl.num_programs(1) - 1)
    def _finalize():
        out_ref[...] = (o_ref[...].astype(jnp.float32) + acc_ref[...]
                        + fc2_b_ref[...]).astype(out_ref.dtype)


# ---------------------------------------------------------------------------
# Wrapper
# ---------------------------------------------------------------------------
def cross_attention(x, queries, gamma, beta, fc1_w, fc1_b, fc2_w, fc2_b):
    B, N, D = x.shape
    M = queries.shape[0]
    assert M == 1, "kernel specialized to the module defaults (num_queries == num_heads == 1)"
    Hid = fc1_w.shape[1]
    scale = D ** (-0.5)                 # head_dim == D since num_heads == 1
    itemsize = jnp.dtype(x.dtype).itemsize
    w_itemsize = jnp.dtype(fc1_w.dtype).itemsize

    vmem_limit, x_budget, w_budget, row_budget = _device_budgets()

    # Pad batch to a multiple of 8: batch rows become the second-minor (sublane) dim of
    # the 2-D output blocks, so tiles stay dense even for awkward B.
    B_pad = _round_up(B, 8)
    want_two = B_pad >= 16              # keep >=2 'parallel' grid steps for v7x's 2 TCs
    if B_pad != B:
        x = jnp.pad(x, ((0, B_pad - B), (0, 0), (0, 0)))

    # ---- Phase 1: attention --------------------------------------------------------
    attn_row_bytes = 2 * N * D * itemsize + 2 * D * itemsize + 2 * N * 4  # double-buffered
    tb = _row_tile(B_pad, attn_row_bytes, x_budget, want_two)

    attn_cost = pl.CostEstimate(
        flops=int(4 * B_pad * N * D + 6 * B_pad * N),
        transcendentals=int(B_pad * N),
        bytes_accessed=int(B_pad * N * D * itemsize + D * itemsize
                           + B_pad * D * itemsize + B_pad * N * 4))

    o_p, scores_p = pl.pallas_call(
        functools.partial(_attention_kernel, scale=scale),
        out_shape=(jax.ShapeDtypeStruct((B_pad, D), x.dtype),
                   jax.ShapeDtypeStruct((B_pad, N), jnp.float32)),
        grid_spec=pltpu.PrefetchScalarGridSpec(
            num_scalar_prefetch=0,
            grid=(B_pad // tb,),
            in_specs=[
                pl.BlockSpec((M, D), lambda b: (0, 0)),           # learnable queries
                pl.BlockSpec((tb, N, D), lambda b: (b, 0, 0)),    # x, tb batch rows / step
            ],
            out_specs=[
                pl.BlockSpec((tb, D), lambda b: (b, 0)),          # attention output (dense)
                pl.BlockSpec((tb, N), lambda b: (b, 0)),          # raw attention scores
            ],
        ),
        compiler_params=pltpu.CompilerParams(
            dimension_semantics=("parallel",),
            vmem_limit_bytes=vmem_limit),
        cost_estimate=attn_cost,
    )(queries, x)

    # ---- Phase 2: residual MLP -----------------------------------------------------
    th = _hidden_tile(D, Hid, w_itemsize, w_budget)
    mlp_row_bytes = D * (4 * itemsize + 4 + w_itemsize)   # o/out dbuf + f32 acc + y scratch
    tbm = _row_tile(B_pad, mlp_row_bytes, row_budget, want_two)

    mlp_cost = pl.CostEstimate(
        flops=int(4 * B_pad * D * Hid + 8 * B_pad * D + 10 * B_pad * Hid),
        transcendentals=int(B_pad * Hid + B_pad),
        bytes_accessed=int(2 * B_pad * D * itemsize
                           + (2 * D * Hid + Hid + 3 * D) * w_itemsize))

    out_p = pl.pallas_call(
        functools.partial(_mlp_kernel, eps=_LN_EPS),
        out_shape=jax.ShapeDtypeStruct((B_pad, D), x.dtype),
        grid_spec=pltpu.PrefetchScalarGridSpec(
            num_scalar_prefetch=0,
            grid=(B_pad // tbm, Hid // th),
            in_specs=[
                pl.BlockSpec((tbm, D), lambda i, j: (i, 0)),      # attention output o
                pl.BlockSpec((1, D),   lambda i, j: (0, 0)),      # mlp_norm gamma
                pl.BlockSpec((1, D),   lambda i, j: (0, 0)),      # mlp_norm beta
                pl.BlockSpec((D, th),  lambda i, j: (0, j)),      # fc1 weight (in, out) slice
                pl.BlockSpec((1, th),  lambda i, j: (0, j)),      # fc1 bias slice
                pl.BlockSpec((th, D),  lambda i, j: (j, 0)),      # fc2 weight (in, out) slice
                pl.BlockSpec((1, D),   lambda i, j: (0, 0)),      # fc2 bias
            ],
            out_specs=pl.BlockSpec((tbm, D), lambda i, j: (i, 0)),
            scratch_shapes=[pltpu.VMEM((tbm, D), jnp.float32),    # fc2 accumulator
                            pltpu.VMEM((tbm, D), fc1_w.dtype)],   # LayerNorm(o) cache
        ),
        compiler_params=pltpu.CompilerParams(
            dimension_semantics=("parallel", "arbitrary"),
            vmem_limit_bytes=vmem_limit),
        cost_estimate=mlp_cost,
    )(o_p, gamma, beta, fc1_w, fc1_b, fc2_w, fc2_b)

    out = out_p[:B] if B_pad != B else out_p
    scores = scores_p[:B] if B_pad != B else scores_p
    return out, scores


if __name__ == "__main__":
    B, N, D, M = 4, 16, 32, 1
    Hid = int(D * 4.0)

    key = jax.random.PRNGKey(0)
    ks = jax.random.split(key, 6)

    x = jax.random.normal(ks[0], (B, N, D), jnp.float32)
    # TODO(synk): trunc_normal_tf_ approximated with an untruncated normal (synthetic init).
    queries = jax.random.normal(ks[1], (M, D), jnp.float32) * (D ** -0.5)
    gamma = jnp.ones((1, D), jnp.float32)        # nn.LayerNorm default affine init
    beta = jnp.zeros((1, D), jnp.float32)
    fc1_w = jax.random.normal(ks[2], (D, Hid), jnp.float32) * (1.0 / math.sqrt(D))
    fc1_b = jax.random.normal(ks[3], (1, Hid), jnp.float32) * 0.01
    fc2_w = jax.random.normal(ks[4], (Hid, D), jnp.float32) * (1.0 / math.sqrt(Hid))
    fc2_b = jax.random.normal(ks[5], (1, D), jnp.float32) * 0.01

    out, scores = cross_attention(x, queries, gamma, beta, fc1_w, fc1_b, fc2_w, fc2_b)
    jax.block_until_ready((out, scores))

    # Pure-JAX reference mirroring the torch forward (defaults: identities, H=M=1).
    def ref_forward(x):
        scale = D ** -0.5
        attn = jnp.einsum("md,bnd->bmn", queries, x)           # (B, M, N), H=1
        sc = attn.sum(axis=1)                                  # sum over (H, M) -> (B, N)
        p = jax.nn.softmax(attn * scale, axis=-1)
        o = jnp.einsum("bmn,bnd->bmd", p, x)[:, 0]             # (B, D), squeeze(1)
        mu = o.mean(-1, keepdims=True)
        var = ((o - mu) ** 2).mean(-1, keepdims=True)
        y = (o - mu) / jnp.sqrt(var + _LN_EPS) * gamma + beta
        h = y @ fc1_w + fc1_b
        h = 0.5 * h * (1.0 + lax.erf(h / jnp.sqrt(2.0)))
        return o + (h @ fc2_w + fc2_b), sc

    r_out, r_sc = ref_forward(x)
    assert np.allclose(np.asarray(scores), np.asarray(r_sc), rtol=1e-4, atol=1e-4)
    assert np.allclose(np.asarray(out), np.asarray(r_out), rtol=2e-3, atol=2e-3)
    print("KERNEL_OK")
</pallas_src>

<mosaic_0001>
module attributes {stable_mosaic.version = 11 : i64} {
  func.func @_attention_kernel(%arg0: i32, %arg1: memref<1x32xf32, #tpu.memory_space<vmem>>, %arg2: memref<8x16x32xf32, #tpu.memory_space<vmem>>, %arg3: memref<8x32xf32, #tpu.memory_space<vmem>>, %arg4: memref<8x16xf32, #tpu.memory_space<vmem>>) attributes {dimension_semantics = [#tpu.dimension_semantics<parallel>], iteration_bounds = array<i64: 1>, scalar_prefetch = 0 : i64, scratch_operands = 0 : i64, tpu.core_type = #tpu.core_type<tc>, window_params = [{pipeline_mode = #tpu.pipeline_mode<synchronous>, transform_indices = @transform_0, window_bounds = array<i64: 1, 32>}, {transform_indices = @transform_1, window_bounds = array<i64: 8, 16, 32>}, {transform_indices = @transform_2, window_bounds = array<i64: 8, 32>}, {transform_indices = @transform_3, window_bounds = array<i64: 8, 16>}]} {
    %c0 = arith.constant 0 : index
    %c0_0 = arith.constant 0 : index
    %c0_1 = arith.constant 0 : index
    %0 = vector.load %arg2[%c0, %c0_0, %c0_1] : memref<8x16x32xf32, #tpu.memory_space<vmem>>, vector<8x16x32xf32>
    %c0_2 = arith.constant 0 : index
    %c0_3 = arith.constant 0 : index
    %1 = vector.load %arg1[%c0_2, %c0_3] : memref<1x32xf32, #tpu.memory_space<vmem>>, vector<1x32xf32>
    %2 = vector.shape_cast %1 : vector<1x32xf32> to vector<1x1x32xf32>
    %3 = vector.broadcast %2 : vector<1x1x32xf32> to vector<8x16x32xf32>
    %4 = arith.mulf %0, %3 : vector<8x16x32xf32>
    %cst = arith.constant dense<0.000000e+00> : vector<8x16xf32>
    %5 = vector.multi_reduction <add>, %4, %cst [2] : vector<8x16x32xf32> to vector<8x16xf32>
    %c0_4 = arith.constant 0 : index
    %c0_5 = arith.constant 0 : index
    %6 = vector.load %arg4[%c0_4, %c0_5] : memref<8x16xf32, #tpu.memory_space<vmem>>, vector<8x16xf32>
    tpu.vector_store %arg4[%c0_4, %c0_5], %5 {strides = array<i32>} : memref<8x16xf32, #tpu.memory_space<vmem>>, vector<8x16xf32>,
    %cst_6 = arith.constant 0.176776692 : f32
    %7 = vector.broadcast %cst_6 : f32 to vector<8x16xf32>
    %8 = arith.mulf %5, %7 : vector<8x16xf32>
    %cst_7 = arith.constant dense<0xFF800000> : vector<8xf32>
    %9 = vector.multi_reduction <maximumf>, %8, %cst_7 [1] : vector<8x16xf32> to vector<8xf32>
    %10 = vector.shape_cast %9 : vector<8xf32> to vector<8x1xf32>
    %11 = vector.broadcast %10 : vector<8x1xf32> to vector<8x16xf32>
    %12 = arith.subf %8, %11 : vector<8x16xf32>
    %13 = math.exp %12 : vector<8x16xf32>
    %cst_8 = arith.constant dense<0.000000e+00> : vector<8xf32>
    %14 = vector.multi_reduction <add>, %13, %cst_8 [1] : vector<8x16xf32> to vector<8xf32>
    %15 = vector.shape_cast %14 : vector<8xf32> to vector<8x1xf32>
    %16 = vector.broadcast %15 : vector<8x1xf32> to vector<8x16xf32>
    %17 = arith.divf %13, %16 : vector<8x16xf32>
    %18 = vector.shape_cast %17 : vector<8x16xf32> to vector<8x16x1xf32>
    %19 = vector.broadcast %18 : vector<8x16x1xf32> to vector<8x16x32xf32>
    %20 = arith.mulf %19, %0 : vector<8x16x32xf32>
    %cst_9 = arith.constant dense<0.000000e+00> : vector<8x32xf32>
    %21 = vector.multi_reduction <add>, %20, %cst_9 [1] : vector<8x16x32xf32> to vector<8x32xf32>
    %c0_10 = arith.constant 0 : index
    %c0_11 = arith.constant 0 : index
    %22 = vector.load %arg3[%c0_10, %c0_11] : memref<8x32xf32, #tpu.memory_space<vmem>>, vector<8x32xf32>
    tpu.vector_store %arg3[%c0_10, %c0_11], %21 {strides = array<i32>} : memref<8x32xf32, #tpu.memory_space<vmem>>, vector<8x32xf32>,
    return
  }
  func.func @transform_0(%arg0: i32) -> (i32, i32) {
    %c0_i32 = arith.constant 0 : i32
    %c0_i32_0 = arith.constant 0 : i32
    %c0_i32_1 = arith.constant 0 : i32
    return %c0_i32, %c0_i32_0 : i32, i32
  }
  func.func @transform_1(%arg0: i32) -> (i32, i32, i32) {
    %c0_i32 = arith.constant 0 : i32
    %c0_i32_0 = arith.constant 0 : i32
    %c0_i32_1 = arith.constant 0 : i32
    return %arg0, %c0_i32, %c0_i32_0 : i32, i32, i32
  }
  func.func @transform_2(%arg0: i32) -> (i32, i32) {
    %c0_i32 = arith.constant 0 : i32
    %c0_i32_0 = arith.constant 0 : i32
    return %arg0, %c0_i32 : i32, i32
  }
  func.func @transform_3(%arg0: i32) -> (i32, i32) {
    %c0_i32 = arith.constant 0 : i32
    %c0_i32_0 = arith.constant 0 : i32
    return %arg0, %c0_i32 : i32, i32
  }
}

</mosaic_0001>

<bundles_post_ra>
// kernel: tpu_custom_call.1
= control target key start
LH: loop header
LB: loop body
LE: loop exit
PB: predicated region body
PF: predicated region fallthrough
CT: control target
= control target key end

     0   :  { %9 = vsyncpa [#allocation3], 0  ;;  %s1408_s0 = inlined_call_operand.hbm [shape: f32[1,32], index: 0, kind: input, shape index: {}]   ;;  %s1409_s1 = inlined_call_operand.hbm [shape: f32[8,16,32], index: 1, kind: input, shape index: {}]   ;;  %s1410_s2 = inlined_call_operand.hbm [shape: f32[8,32], index: 2, kind: output, shape index: {0}]   ;;  %s1411_s3 = inlined_call_operand.hbm [shape: f32[8,16], index: 3, kind: output, shape index: {1}]  }
   0x1   :  { %10 = vsyncpa [#allocation6], 0 }
   0x2   :  { %11 = vsyncpa [#allocation4], 0 }
   0x3   :  { %12 = vsyncpa [#allocation9], 0  ;;  %s18_s14 = sshll.u32 %s1408_s0, 4  ;;  %s949_s15 = smov [#allocation2]   ;;  %s19_s14 = int_to_ptr.hbm [resolvable:$true] %s18_s14 }
   0x4   :  { %s20_s16 = sshll.u32 %s949_s15, 4  ;;  %s28_s19 = sshll.u32 %s1409_s1, 4  ;;  %s21_s16 = int_to_ptr.vmem [resolvable:$true] %s20_s16  ;;  %s29_s19 = int_to_ptr.hbm [resolvable:$true] %s28_s19 }
   0x5   :  { %23 = dma.hbm_to_vmem [thread:$0]  %s19_s14, 16, %s21_s16, [#allocation3]  }
   0x6   :  { %s950_s20 = smov [#allocation5]   ;;  %s951_s22 = smov 128  }
   0x7   :  { %s30_s21 = sshll.u32 %s950_s20, 4  ;;  %s952_s23 = smov 8   ;;  %s31_s21 = int_to_ptr.vmem [resolvable:$true] %s30_s21 }
   0x8   :  { %36 = dma.hbm_to_vmem [thread:$0]  %s29_s19, 2048, %s31_s21, [#allocation6], %s951_s22, %s951_s22, %s952_s23  }
   0x9   :  { %941 = dma.done.wait [#allocation3], 16  }
   0xa   :  { %942 = vsyncadd [#allocation3], 4294967280 }
   0xb   :  { %943 = dma.done.wait [#allocation6], 2048  }
   0xc   :  { %944 = vsyncadd [#allocation6], 4294965248  ;;  %v982_v0 = vld [vmem:[#allocation5 + $0x20] sm:$0xff]  ;;  %v796_v1 = vld [vmem:[#allocation2] ss:$0 sm:$0xff]  ;;  %vm81_vm0 = vcmask 261120   ;;  %v146_v55 = vlaneseq }
   0xd   :  { %v984_v2 = vld [vmem:[#allocation5 + $0x10] sm:$0xff]  ;;  %v986_v3 = vld [vmem:[#allocation5] sm:$0xff]  ;;  %v69_v4 = vmul.f32 %v796_v1, %v982_v0  ;;  %v991_v7 = vld [vmem:[#allocation5 + $0x28] sm:$0xff]  ;;  %vm151_vm1 = vcmask 130112   ;;  %vm174_vm2 = vcmask 1041409   ;;  %vm176_vm3 = vcmask 1042434  }
   0xe   :  { %v67_v5 = vmul.f32 %v796_v1, %v984_v2  ;;  %v65_v6 = vmul.f32 %v796_v1, %v986_v3  ;;  %v993_v8 = vld [vmem:[#allocation5 + $0x18] sm:$0xff]  ;;  %v998_v12 = vld [vmem:[#allocation5 + $0x8] sm:$0xff]  ;;  %v70_v13 = vmul.f32 %v796_v1, %v991_v7  ;;  %v1008_v20 = vld [vmem:[#allocation5 + $0x40] sm:$0xff]  ;;  %v1048_v59 = vand.u32 127, %v146_v55  ;;  %s954_s0 = smov [#allocation8]   ;;  %s770_s26 = sshll.u32 %s1411_s3, 4  ;;  %s771_s26 = int_to_ptr.hbm [resolvable:$true] %s770_s26 }
   0xf   :  { %v94_v9 = vsel %vm81_vm0, %v69_v4, 0.0  ;;  %v68_v14 = vmul.f32 %v796_v1, %v993_v8  ;;  %v66_v15 = vmul.f32 %v796_v1, %v998_v12  ;;  %v1006_v19 = vld [vmem:[#allocation5 + $0x38] sm:$0xff]  ;;  %v1010_v21 = vld [vmem:[#allocation5 + $0x30] sm:$0xff]  ;;  %v73_v23 = vmul.f32 %v796_v1, %v1008_v20  ;;  %v1022_v30 = vld [vmem:[#allocation5 + $0x48] sm:$0xff]  ;;  %s768_s1 = sshll.u32 %s954_s0, 4  ;;  %s955_s3 = smov [#allocation7]   ;;  %s769_s1 = int_to_ptr.vmem [resolvable:$true] %s768_s1 }
  0x10   :  { %v88_v10 = vsel %vm81_vm0, %v67_v5, 0.0  ;;  %v82_v11 = vsel %vm81_vm0, %v65_v6, 0.0  ;;  %95 = vadd.xlane.f32.xlu2 %v94_v9  ;;  %v97_v16 = vsel %vm81_vm0, %v70_v13, 0.0  ;;  %v72_v22 = vmul.f32 %v796_v1, %v1006_v19  ;;  %v1018_v28 = vld [vmem:[#allocation5 + $0x50] sm:$0xff]  ;;  %v1020_v29 = vld [vmem:[#allocation5 + $0x58] sm:$0xff]  ;;  %v1030_v37 = vld [vmem:[#allocation5 + $0x68] sm:$0xff] }
  0x11   :  { %89 = vadd.xlane.f32.xlu1 %v88_v10  ;;  %83 = vadd.xlane.f32.xlu0 %v82_v11  ;;  %v91_v17 = vsel %vm81_vm0, %v68_v14, 0.0  ;;  %v85_v18 = vsel %vm81_vm0, %v66_v15, 0.0  ;;  %v71_v24 = vmul.f32 %v796_v1, %v1010_v21  ;;  %v106_v26 = vsel %vm81_vm0, %v73_v23, 0.0  ;;  %v1032_v38 = vld [vmem:[#allocation5 + $0x70] sm:$0xff]  ;;  %v1034_v39 = vld [vmem:[#allocation5 + $0x60] sm:$0xff]  ;;  %v1042_v46 = vld [vmem:[#allocation5 + $0x78] sm:$0xff] }
  0x12   :  { %v103_v25 = vsel %vm81_vm0, %v72_v22, 0.0  ;;  %v75_v31 = vmul.f32 %v796_v1, %v1018_v28  ;;  %v76_v32 = vmul.f32 %v796_v1, %v1020_v29  ;;  %v74_v33 = vmul.f32 %v796_v1, %v1022_v30  ;;  %s757_s27 = sshll.u32 %s955_s3, 4  ;;  %s759_s30 = sshll.u32 %s1410_s2, 4  ;;  %s758_s27 = int_to_ptr.vmem [resolvable:$true] %s757_s27  ;;  %s760_s30 = int_to_ptr.hbm [resolvable:$true] %s759_s30 }
  0x13   :  { %v100_v27 = vsel %vm81_vm0, %v71_v24, 0.0  ;;  %v78_v40 = vmul.f32 %v796_v1, %v1030_v37  ;;  %v79_v41 = vmul.f32 %v796_v1, %v1032_v38  ;;  %v77_v42 = vmul.f32 %v796_v1, %v1034_v39 }
  0x14   :  { %v112_v34 = vsel %vm81_vm0, %v75_v31, 0.0  ;;  %v115_v35 = vsel %vm81_vm0, %v76_v32, 0.0  ;;  %v109_v36 = vsel %vm81_vm0, %v74_v33, 0.0  ;;  %v80_v47 = vmul.f32 %v796_v1, %v1042_v46 }
  0x15   :  { %v121_v43 = vsel %vm81_vm0, %v78_v40, 0.0  ;;  %v124_v44 = vsel %vm81_vm0, %v79_v41, 0.0  ;;  %v118_v45 = vsel %vm81_vm0, %v77_v42, 0.0  ;;  %v1051_v60 = vadd.s32 4294967288, %v1048_v59 }
  0x16   :  { %v127_v48 = vsel %vm81_vm0, %v80_v47, 0.0  ;;  %vm178_vm4 = vcmask 1043459   ;;  %vm180_vm5 = vcmask 1044484   ;;  %vm182_vm6 = vcmask 1045509  }
  0x17   :  { %vm184_vm7 = vcmask 1046534   ;;  %vm186_vm8 = vcmask 1047559   ;;  %vm189_vm9 = vcmask 130048  }
  0x18   :  { %98 = vadd.xlane.f32.xlu2 %v97_v16 }
  0x19   :  { %92 = vadd.xlane.f32.xlu1 %v91_v17  ;;  %86 = vadd.xlane.f32.xlu0 %v85_v18 }
  0x20   :  { %107 = vadd.xlane.f32.xlu2 %v106_v26 }
  0x21   :  { %104 = vadd.xlane.f32.xlu1 %v103_v25  ;;  %101 = vadd.xlane.f32.xlu0 %v100_v27 }
  0x28   :  { %116 = vadd.xlane.f32.xlu2 %v115_v35 }
  0x29   :  { %113 = vadd.xlane.f32.xlu1 %v112_v34  ;;  %110 = vadd.xlane.f32.xlu0 %v109_v36 }
  0x30   :  { %125 = vadd.xlane.f32.xlu2 %v124_v44 }
  0x31   :  { %122 = vadd.xlane.f32.xlu1 %v121_v43  ;;  %119 = vadd.xlane.f32.xlu0 %v118_v45 }
  0x39   :  { %128 = vadd.xlane.f32.xlu0 %v127_v48 }
  0x83   :  { %v96_v49 = vpop.xlane.xlu2 %95 }
  0x84   :  { %v90_v50 = vpop.xlane.xlu1 %89  ;;  %v84_v51 = vpop.xlane.xlu0 %83  ;;  %v1061_v4 = vmul.f32 0.17677669, %v96_v49  ;;  %v156_v18 = vperm.slane %v96_v49, %v1048_v59 }
  0x85   :  { %v1053_v61 = vmul.f32 0.17677669, %v90_v50  ;;  %v1063_v5 = vmul.f32 0.17677669, %v84_v51  ;;  %v153_v10 = vperm.slane %v90_v50, %v1048_v59  ;;  %v148_v22 = vperm.slane %v84_v51, %v1048_v59 }
  0x86   :  { %v229_v24 = vperm.slane %v1061_v4, %v1048_v59 }
  0x87   :  { %v226_v14 = vperm.slane %v1053_v61, %v1048_v59  ;;  %v223_v25 = vperm.slane %v1063_v5, %v1048_v59 }
  0x8b   :  { %v99_v52 = vpop.xlane.xlu2 %98 }
  0x8c   :  { %v93_v53 = vpop.xlane.xlu1 %92  ;;  %v87_v54 = vpop.xlane.xlu0 %86  ;;  %v1065_v6 = vmul.f32 0.17677669, %v99_v52  ;;  %v157_v23 = vperm.slane %v99_v52, %v1051_v60 }
  0x8d   :  { %v1055_v62 = vmul.f32 0.17677669, %v93_v53  ;;  %v1057_v63 = vmul.f32 0.17677669, %v87_v54  ;;  %v154_v11 = vperm.slane %v93_v53, %v1051_v60  ;;  %v150_v13 = vperm.slane %v87_v54, %v1051_v60 }
  0x8e   :  { %v230_v26 = vperm.slane %v1065_v6, %v1051_v60  ;;  %v158_v41 = vsel %vm151_vm1, %v157_v23, %v156_v18 }
  0x8f   :  { %v227_v15 = vperm.slane %v1055_v62, %v1051_v60  ;;  %v224_v16 = vperm.slane %v1057_v63, %v1051_v60  ;;  %v155_v27 = vsel %vm151_vm1, %v154_v11, %v153_v10  ;;  %v152_v31 = vsel %vm151_vm1, %v150_v13, %v148_v22 }
  0x90   :  { %v231_v47 = vsel %vm151_vm1, %v230_v26, %v229_v24  ;;  %v175_v52 = vsel %vm174_vm2, %v155_v27, %v152_v31 }
  0x91   :  { %v228_v34 = vsel %vm151_vm1, %v227_v15, %v226_v14  ;;  %v225_v35 = vsel %vm151_vm1, %v224_v16, %v223_v25  ;;  %v177_v24 = vsel %vm176_vm3, %v158_v41, %v175_v52 }
  0x92   :  { %v247_v53 = vsel %vm174_vm2, %v228_v34, %v225_v35 }
  0x93   :  { %v1046_v58 = vpop.xlane.xlu2 %107 }
  0x94   :  { %v105_v56 = vpop.xlane.xlu1 %104  ;;  %v102_v57 = vpop.xlane.xlu0 %101  ;;  %v1094_v36 = vmul.f32 0.17677669, %v1046_v58  ;;  %v162_v48 = vperm.slane %v1046_v58, %v1048_v59 }
  0x95   :  { %v1087_v32 = vmul.f32 0.17677669, %v105_v56  ;;  %v1089_v33 = vmul.f32 0.17677669, %v102_v57  ;;  %v160_v42 = vperm.slane %v105_v56, %v1051_v60  ;;  %v159_v43 = vperm.slane %v102_v57, %v1048_v59 }
  0x96   :  { %v235_v56 = vperm.slane %v1094_v36, %v1048_v59 }
  0x97   :  { %v233_v54 = vperm.slane %v1087_v32, %v1051_v60  ;;  %v232_v55 = vperm.slane %v1089_v33, %v1048_v59  ;;  %v161_v11 = vsel %vm151_vm1, %v160_v42, %v159_v43  ;;  %v248_v42 = vsel %vm176_vm3, %v231_v47, %v247_v53 }
  0x99   :  { %v234_v25 = vsel %vm151_vm1, %v233_v54, %v232_v55 }
  0x9b   :  { %v117_v17 = vpop.xlane.xlu2 %116 }
  0x9c   :  { %v1059_v1 = vpop.xlane.xlu1 %113  ;;  %v111_v9 = vpop.xlane.xlu0 %110  ;;  %v1108_v50 = vmul.f32 0.17677669, %v117_v17  ;;  %v166_v15 = vperm.slane %v117_v17, %v1051_v60 }
  0x9d   :  { %v1096_v40 = vmul.f32 0.17677669, %v111_v9  ;;  %v1102_v44 = vmul.f32 0.17677669, %v1059_v1  ;;  %v163_v49 = vperm.slane %v111_v9, %v1051_v60  ;;  %v165_v13 = vperm.slane %v1059_v1, %v1048_v59 }
  0x9e   :  { %v239_v18 = vperm.slane %v1108_v50, %v1051_v60  ;;  %v179_v1 = vsel %vm178_vm4, %v161_v11, %v177_v24 }
  0x9f   :  { %v236_v57 = vperm.slane %v1096_v40, %v1051_v60  ;;  %v238_v14 = vperm.slane %v1102_v44, %v1048_v59  ;;  %v164_v16 = vsel %vm151_vm1, %v163_v49, %v162_v48  ;;  %v167_v35 = vsel %vm151_vm1, %v166_v15, %v165_v13 }
  0xa0   :  { %v181_v34 = vsel %vm180_vm5, %v164_v16, %v179_v1  ;;  %v249_v49 = vsel %vm178_vm4, %v234_v25, %v248_v42 }
  0xa1   :  { %v237_v17 = vsel %vm151_vm1, %v236_v57, %v235_v56  ;;  %v240_v48 = vsel %vm151_vm1, %v239_v18, %v238_v14  ;;  %v183_v56 = vsel %vm182_vm6, %v167_v35, %v181_v34 }
  0xa2   :  { %v250_v55 = vsel %vm180_vm5, %v237_v17, %v249_v49 }
  0xa3   :  { %v126_v10 = vpop.xlane.xlu2 %125  ;;  %v251_v11 = vsel %vm182_vm6, %v240_v48, %v250_v55 }
  0xa4   :  { %v123_v45 = vpop.xlane.xlu1 %122  ;;  %v120_v51 = vpop.xlane.xlu0 %119  ;;  %v1137_v26 = vmul.f32 0.17677669, %v126_v10  ;;  %v171_v41 = vperm.slane %v126_v10, %v1048_v59 }
  0xa5   :  { %v1120_v58 = vmul.f32 0.17677669, %v123_v45  ;;  %v1122_v9 = vmul.f32 0.17677669, %v120_v51  ;;  %v169_v22 = vperm.slane %v123_v45, %v1051_v60  ;;  %v168_v23 = vperm.slane %v120_v51, %v1048_v59 }
  0xa6   :  { %v244_v51 = vperm.slane %v1137_v26, %v1048_v59 }
  0xa7   :  { %v242_v27 = vperm.slane %v1120_v58, %v1051_v60  ;;  %v241_v31 = vperm.slane %v1122_v9, %v1048_v59  ;;  %v170_v43 = vsel %vm151_vm1, %v169_v22, %v168_v23  ;;  %v953_v22 = vmov 0  }
  0xa8   :  { %v185_v10 = vsel %vm184_vm7, %v170_v43, %v183_v56  ;;  %795 = vset.pattern.permute.xlu1 %v953_v22  ;;  %794 = vset.pattern.permute.xlu0 %v953_v22 }
  0xa9   :  { %v243_v47 = vsel %vm151_vm1, %v242_v27, %v241_v31  ;;  %793 = vset.pattern.permute.xlu2 %v953_v22 }
  0xaa   :  { %v252_v15 = vsel %vm184_vm7, %v243_v47, %v251_v11 }
  0xac   :  { %v129_v45 = vpop.xlane.xlu0 %128 }
  0xad   :  { %v172_v52 = vperm.slane %v129_v45, %v1051_v60  ;;  %v1155_v54 = vmul.f32 0.17677669, %v129_v45 }
  0xaf   :  { %v173_v53 = vsel %vm151_vm1, %v172_v52, %v171_v41  ;;  %v245_v57 = vperm.slane %v1155_v54, %v1051_v60 }
  0xb0   :  { %v187_v13 = vsel %vm186_vm8, %v173_v53, %v185_v10 }
  0xb1   :  { %v246_v14 = vsel %vm151_vm1, %v245_v57, %v244_v51  ;;  %190 = vst.msk [vmem:[#allocation8] sm:$0xff] %vm189_vm9, %v187_v13 }
  0xb2   :  { %v253_v16 = vsel %vm186_vm8, %v246_v14, %v252_v15  ;;  %773 = dma.vmem_to_hbm [thread:$0]  %s769_s1, 128, %s771_s26, [#allocation9]  }
  0xb3   :  { %v255_v18 = vsel %vm189_vm9, %v253_v16, -inf }
  0xb4   :  { %256 = vmax.xlane.f32.xlu1 %v255_v18 }
 0x127   :  { %v1171_v23 = vpop.xlane.xlu1 %256 }
 0x128   :  { %v260_v24 = vperm.slane %v1171_v23, 1  ;;  %v259_v25 = vperm.slane %v1171_v23, 0  ;;  %v261_v31 = vperm.slane %v1171_v23, 2  ;;  %v263_v34 = vperm.slane %v1171_v23, 4 }
 0x129   :  { %v264_v49 = vperm.slane %v1171_v23, 5  ;;  %v266_v57 = vperm.slane %v1171_v23, 7  ;;  %v265_v16 = vperm.slane %v1171_v23, 6 }
 0x12a   :  { %v277_v1 = vsub.f32 %v1053_v61, %v260_v24  ;;  %v276_v17 = vsub.f32 %v1057_v63, %v259_v25  ;;  %v275_v27 = vsub.f32 %v1063_v5, %v259_v25  ;;  %v280_v43 = vsub.f32 %v1065_v6, %v261_v31 }
 0x12b   :  { %v283_v45 = vsub.f32 %v1094_v36, %v263_v34  ;;  %v278_v61 = vsub.f32 %v1055_v62, %v260_v24  ;;  %v262_v63 = vperm.slane %v1171_v23, 3  ;;  %v286_v36 = vsub.f32 %v1108_v50, %v264_v49 }
 0x12c   :  { %v295_v35 = vmul.f32 1.442695, %v277_v1  ;;  %v293_v41 = vmul.f32 1.442695, %v276_v17  ;;  %v291_v42 = vmul.f32 1.442695, %v275_v27  ;;  %v279_v56 = vsub.f32 %v1061_v4, %v261_v31 }
 0x12d   :  { %v301_v48 = vmul.f32 1.442695, %v280_v43  ;;  %v307_v5 = vmul.f32 1.442695, %v283_v45  ;;  %v297_v52 = vmul.f32 1.442695, %v278_v61  ;;  %v282_v62 = vsub.f32 %v1087_v32, %v262_v63 }
 0x12e   :  { %797 = vpow2.f32 %v295_v35  ;;  %v313_v53 = vmul.f32 1.442695, %v286_v36  ;;  %v299_v11 = vmul.f32 1.442695, %v279_v56  ;;  %v285_v50 = vsub.f32 %v1102_v44, %v264_v49 }
 0x12f   :  { %799 = vpow2.f32 %v293_v41  ;;  %v305_v47 = vmul.f32 1.442695, %v282_v62  ;;  %v289_v4 = vsub.f32 %v1137_v26, %v266_v57  ;;  %v281_v14 = vsub.f32 %v1089_v33, %v262_v63 }
 0x130   :  { %801 = vpow2.f32 %v291_v42  ;;  %v311_v15 = vmul.f32 1.442695, %v285_v50  ;;  %v288_v26 = vsub.f32 %v1120_v58, %v265_v16  ;;  %v284_v33 = vsub.f32 %v1096_v40, %v263_v34 }
 0x131   :  { %803 = vpow2.f32 %v301_v48  ;;  %v319_v18 = vmul.f32 1.442695, %v289_v4  ;;  %v303_v24 = vmul.f32 1.442695, %v281_v14  ;;  %v287_v58 = vsub.f32 %v1122_v9, %v265_v16 }
 0x132   :  { %805 = vpow2.f32 %v307_v5  ;;  %v317_v23 = vmul.f32 1.442695, %v288_v26  ;;  %v309_v17 = vmul.f32 1.442695, %v284_v33  ;;  %v290_v41 = vsub.f32 %v1155_v54, %v266_v57 }
 0x133   :  { %807 = vpow2.f32 %v297_v52  ;;  %v315_v40 = vmul.f32 1.442695, %v287_v58 }
 0x134   :  { %v1185_v51 = vpop.eup %797  ;;  %809 = vpow2.f32 %v305_v47  ;;  %v321_v42 = vmul.f32 1.442695, %v290_v41 }
 0x135   :  { %v1187_v55 = vpop.eup %799  ;;  %346 = vperm.xlu1 %795, %v1185_v51   ;;  %811 = vpow2.f32 %v313_v53 }
 0x136   :  { %v1190_v6 = vpop.eup %801  ;;  %343 = vperm.xlu0 %794, %v1187_v55   ;;  %813 = vpow2.f32 %v299_v11 }
 0x137   :  { %340 = vperm.xlu2 %793, %v1190_v6   ;;  %v1198_v10 = vpop.eup %803  ;;  %815 = vpow2.f32 %v311_v15 }
 0x138   :  { %v1200_v13 = vpop.eup %805  ;;  %817 = vpow2.f32 %v319_v18 }
 0x139   :  { %v1203_v32 = vpop.eup %807  ;;  %819 = vpow2.f32 %v303_v24 }
 0x13a   :  { %v1211_v22 = vpop.eup %809  ;;  %821 = vpow2.f32 %v317_v23 }
 0x13b   :  { %v1213_v25 = vpop.eup %811  ;;  %823 = vpow2.f32 %v309_v17 }
 0x13c   :  { %v1216_v44 = vpop.eup %813  ;;  %825 = vpow2.f32 %v315_v40 }
 0x13d   :  { %355 = vperm.xlu1 %795, %v1198_v10   ;;  %v1222_v1 = vpop.eup %815  ;;  %827 = vpow2.f32 %v321_v42 }
 0x13e   :  { %364 = vperm.xlu0 %794, %v1200_v13   ;;  %v1224_v27 = vpop.eup %817 }
 0x13f   :  { %349 = vperm.xlu2 %793, %v1203_v32   ;;  %v1227_v31 = vpop.eup %819 }
 0x140   :  { %v1232_v35 = vpop.eup %821 }
 0x141   :  { %v1235_v34 = vpop.eup %823 }
 0x142   :  { %v1239_v43 = vpop.eup %825 }
 0x143   :  { %v1242_v45 = vpop.eup %827 }
 0x145   :  { %361 = vperm.xlu1 %795, %v1211_v22  }
 0x146   :  { %373 = vperm.xlu0 %794, %v1213_v25  }
 0x147   :  { %352 = vperm.xlu2 %793, %v1216_v44  }
 0x14d   :  { %370 = vperm.xlu1 %795, %v1222_v1  }
 0x14e   :  { %382 = vperm.xlu0 %794, %v1224_v27  }
 0x14f   :  { %358 = vperm.xlu2 %793, %v1227_v31  }
 0x155   :  { %379 = vperm.xlu1 %795, %v1232_v35  }
 0x157   :  { %367 = vperm.xlu2 %793, %v1235_v34  }
 0x15f   :  { %376 = vperm.xlu2 %793, %v1239_v43  }
 0x167   :  { %385 = vperm.xlu2 %793, %v1242_v45  }
 0x191   :  { %v341_v9 = vpop.permute.xlu2 %340 }
 0x192   :  { %v387_v50 = vperm.slane %v341_v9, %v1048_v59 }
 0x199   :  { %v350_v61 = vpop.permute.xlu2 %349 }
 0x19a   :  { %v391_v4 = vperm.slane %v350_v61, %v1051_v60 }
 0x1a1   :  { %v353_v48 = vpop.permute.xlu2 %352 }
 0x1a2   :  { %v393_v16 = vperm.slane %v353_v48, %v1048_v59 }
 0x1a7   :  { %v347_v63 = vpop.permute.xlu1 %346 }
 0x1a8   :  { %v344_v5 = vpop.permute.xlu0 %343  ;;  %v390_v53 = vperm.slane %v347_v63, %v1048_v59 }
 0x1a9   :  { %v359_v49 = vpop.permute.xlu2 %358  ;;  %v388_v57 = vperm.slane %v344_v5, %v1051_v60 }
 0x1aa   :  { %v392_v18 = vsel %vm151_vm1, %v391_v4, %v390_v53  ;;  %v396_v26 = vperm.slane %v359_v49, %v1048_v59 }
 0x1ab   :  { %v389_v24 = vsel %vm151_vm1, %v388_v57, %v387_v50 }
 0x1ac   :  { %v411_v58 = vsel %vm174_vm2, %v392_v18, %v389_v24 }
 0x1af   :  { %v356_v52 = vpop.permute.xlu1 %355 }
 0x1b0   :  { %v365_v62 = vpop.permute.xlu0 %364  ;;  %v394_v11 = vperm.slane %v356_v52, %v1051_v60 }
 0x1b1   :  { %v368_v36 = vpop.permute.xlu2 %367  ;;  %v399_v40 = vperm.slane %v365_v62, %v1048_v59 }
 0x1b2   :  { %v395_v33 = vsel %vm151_vm1, %v394_v11, %v393_v16  ;;  %v400_v41 = vperm.slane %v368_v36, %v1051_v60 }
 0x1b3   :  { %v412_v61 = vsel %vm176_vm3, %v395_v33, %v411_v58 }
 0x1b4   :  { %v401_v53 = vsel %vm151_vm1, %v400_v41, %v399_v40 }
 0x1b7   :  { %v362_v54 = vpop.permute.xlu1 %361 }
 0x1b8   :  { %v374_v56 = vpop.permute.xlu0 %373  ;;  %v397_v14 = vperm.slane %v362_v54, %v1051_v60 }
 0x1b9   :  { %v377_v47 = vpop.permute.xlu2 %376  ;;  %v403_v48 = vperm.slane %v374_v56, %v1051_v60 }
 0x1ba   :  { %v398_v23 = vsel %vm151_vm1, %v397_v14, %v396_v26  ;;  %v405_v62 = vperm.slane %v377_v47, %v1048_v59 }
 0x1bb   :  { %v413_v63 = vsel %vm178_vm4, %v398_v23, %v412_v61 }
 0x1bc   :  { %v414_v57 = vsel %vm180_vm5, %v401_v53, %v413_v63 }
 0x1bf   :  { %v371_v15 = vpop.permute.xlu1 %370 }
 0x1c0   :  { %v402_v17 = vperm.slane %v371_v15, %v1048_v59  ;;  %v383_v42 = vpop.permute.xlu0 %382 }
 0x1c1   :  { %v386_v9 = vpop.permute.xlu2 %385  ;;  %v408_v49 = vperm.slane %v383_v42, %v1048_v59 }
 0x1c2   :  { %v404_v5 = vsel %vm151_vm1, %v403_v48, %v402_v17  ;;  %v409_v52 = vperm.slane %v386_v9, %v1051_v60 }
 0x1c3   :  { %v415_v56 = vsel %vm182_vm6, %v404_v5, %v414_v57 }
 0x1c4   :  { %v410_v50 = vsel %vm151_vm1, %v409_v52, %v408_v49 }
 0x1c7   :  { %v380_v54 = vpop.permute.xlu1 %379 }
 0x1c8   :  { %v406_v36 = vperm.slane %v380_v54, %v1051_v60 }
 0x1ca   :  { %v407_v11 = vsel %vm151_vm1, %v406_v36, %v405_v62 }
 0x1cb   :  { %v416_v4 = vsel %vm184_vm7, %v407_v11, %v415_v56 }
 0x1cc   :  { %v417_v14 = vsel %vm186_vm8, %v410_v50, %v416_v4 }
 0x1cd   :  { %v419_v15 = vsel %vm189_vm9, %v417_v14, 0.0 }
 0x1ce   :  { %420 = vadd.xlane.f32.xlu1 %v419_v15 }
 0x241   :  { %v1277_v16 = vpop.xlane.xlu1 %420 }
 0x242   :  { %v423_v59 = vperm.slane %v1277_v16, 0  ;;  %v424_v60 = vperm.slane %v1277_v16, 1  ;;  %v1282_v47 = vperm.slane %v1277_v16, 2  ;;  %v428_v18 = vperm.slane %v1277_v16, 5 }
 0x243   :  { %v1287_v26 = vperm.slane %v1277_v16, 3  ;;  %v1295_v52 = vperm.slane %v1277_v16, 4 }
 0x244   :  { %829 = vrcp.f32 %v423_v59  ;;  %v448_v41 = vand.u32 2147483647, %v423_v59  ;;  %v450_v42 = vand.u32 2147483648, %v423_v59  ;;  %v528_v54 = vand.u32 2147483647, %v428_v18 }
 0x245   :  { %831 = vrcp.f32 %v424_v60  ;;  %vm444_vm11 = vweird.f32 %v423_v59  ;;  %v530_v36 = vand.u32 2147483648, %v428_v18  ;;  %vm460_vm1 = vweird.f32 %v424_v60 }
 0x246   :  { %833 = vrcp.f32 %v1282_v47  ;;  %vm449_vm13 = vcmp.eq.f32.partialorder %v448_v41, 8.507059e+37  ;;  %v451_v57 = vor.u32 1.1754944e-38, %v450_v42  ;;  %vm524_vm9 = vweird.f32 %v428_v18 }
 0x247   :  { %835 = vrcp.f32 %v428_v18  ;;  %v531_v42 = vor.u32 1.1754944e-38, %v530_v36 }
 0x248   :  { %837 = vrcp.f32 %v1287_v26 }
 0x249   :  { %839 = vrcp.f32 %v1295_v52 }
 0x24a   :  { %v830_v24 = vpop.eup %829 }
 0x24b   :  { %v832_v33 = vpop.eup %831  ;;  %v440_v23 = vmul.f32 %v830_v24, %v423_v59  ;;  %vm445_vm10 = vweird.f32 %v830_v24  ;;  %v464_v59 = vand.u32 2147483647, %v424_v60 }
 0x24c   :  { %v1289_v17 = vpop.eup %833  ;;  %v456_v58 = vmul.f32 %v832_v33, %v424_v60  ;;  %vm446_vm12 = vmor %vm444_vm11, %vm445_vm10  ;;  %vm461_vm14 = vweird.f32 %v832_v33 }
 0x24d   :  { %v441_v40 = vsub.f32 1.0, %v440_v23  ;;  %v836_v61 = vpop.eup %835  ;;  %v472_v63 = vmul.f32 %v1289_v17, %v1282_v47  ;;  %v466_v23 = vand.u32 2147483648, %v424_v60  ;;  %vm1302_vm10 = vmor %vm460_vm1, %vm461_vm14  ;;  %vm477_vm14 = vweird.f32 %v1289_v17 }
 0x24e   :  { %v457_v9 = vsub.f32 1.0, %v456_v58  ;;  %v520_v5 = vmul.f32 %v836_v61, %v428_v18  ;;  %v1297_v4 = vpop.eup %837  ;;  %vm525_vm15 = vweird.f32 %v836_v61 }
 0x24f   :  { %v442_v48 = vmul.f32 %v830_v24, %v441_v40  ;;  %v473_v50 = vsub.f32 1.0, %v472_v63  ;;  %vm526_vm11 = vmor %vm524_vm9, %vm525_vm15  ;;  %v1314_v63 = vperm.slane %v1277_v16, 6  ;;  %vm476_vm15 = vweird.f32 %v1282_v47 }
 0x250   :  { %v458_v49 = vmul.f32 %v832_v33, %v457_v9  ;;  %v521_v62 = vsub.f32 1.0, %v520_v5  ;;  %vm478_vm1 = vmor %vm476_vm15, %vm477_vm14  ;;  %vm508_vm15 = vweird.f32 %v1295_v52 }
 0x251   :  { %v443_v53 = vadd.f32 %v830_v24, %v442_v48  ;;  %v467_v48 = vor.u32 1.1754944e-38, %v466_v23  ;;  %841 = vrcp.f32 %v1314_v63  ;;  %v498_v23 = vand.u32 2147483648, %v1287_v26 }
 0x252   :  { %v459_v56 = vadd.f32 %v832_v33, %v458_v49  ;;  %v522_v14 = vmul.f32 %v836_v61, %v521_v62  ;;  %v840_v62 = vpop.eup %839 }
 0x253   :  { %v447_v11 = vsel %vm446_vm12, %v830_v24, %v443_v53  ;;  %vm529_vm12 = vcmp.eq.f32.partialorder %v528_v54, 8.507059e+37  ;;  %v499_v24 = vor.u32 1.1754944e-38, %v498_v23  ;;  %vm509_vm14 = vweird.f32 %v840_v62 }
 0x254   :  { %v452_v15 = vsel %vm449_vm13, %v451_v57, %v447_v11  ;;  %v523_v41 = vadd.f32 %v836_v61, %v522_v14  ;;  %v463_v9 = vsel %vm1302_vm10, %v832_v33, %v459_v56  ;;  %vm465_vm13 = vcmp.eq.f32.partialorder %v464_v59, 8.507059e+37 }
 0x255   :  { %v454_v58 = vmul.f32 %v1187_v55, %v452_v15  ;;  %v453_v40 = vmul.f32 %v1190_v6, %v452_v15  ;;  %v474_v55 = vmul.f32 %v1289_v17, %v473_v50  ;;  %v488_v6 = vmul.f32 %v1297_v4, %v1287_v26 }
 0x256   :  { %v527_v60 = vsel %vm526_vm11, %v836_v61, %v523_v41  ;;  %v468_v49 = vsel %vm465_vm13, %v467_v48, %v463_v9  ;;  %v482_v61 = vand.u32 2147483648, %v1282_v47  ;;  %v480_v57 = vand.u32 2147483647, %v1282_v47 }
 0x257   :  { %574 = vperm.xlu2 %793, %v454_v58   ;;  %569 = vperm.xlu0 %794, %v453_v40   ;;  %v1311_v18 = vsel %vm529_vm12, %v531_v42, %v527_v60  ;;  %v475_v33 = vadd.f32 %v1289_v17, %v474_v55  ;;  %v489_v53 = vsub.f32 1.0, %v488_v6  ;;  %v470_v54 = vmul.f32 %v1203_v32, %v468_v49  ;;  %v842_v15 = vpop.eup %841 }
 0x258   :  { %v533_v5 = vmul.f32 %v1222_v1, %v1311_v18  ;;  %v469_v36 = vmul.f32 %v1185_v51, %v468_v49  ;;  %v504_v56 = vmul.f32 %v840_v62, %v1295_v52  ;;  %v483_v50 = vor.u32 1.1754944e-38, %v482_v61 }
 0x259   :  { %v479_v1 = vsel %vm478_vm1, %v1289_v17, %v475_v33  ;;  %v490_v11 = vmul.f32 %v1297_v4, %v489_v53  ;;  %vm481_vm9 = vcmp.eq.f32.partialorder %v480_v57, 8.507059e+37  ;;  %v1330_v32 = vperm.slane %v1277_v16, 7  ;;  %vm510_vm1 = vmor %vm508_vm15, %vm509_vm14 }
 0x25a   :  { %619 = vperm.xlu1 %795, %v533_v5   ;;  %v484_v51 = vsel %vm481_vm9, %v483_v50, %v479_v1  ;;  %vm493_vm10 = vweird.f32 %v1297_v4  ;;  %v505_v47 = vsub.f32 1.0, %v504_v56  ;;  %vm492_vm11 = vweird.f32 %v1287_v26 }
 0x25b   :  { %v491_v14 = vadd.f32 %v1297_v4, %v490_v11  ;;  %v486_v17 = vmul.f32 %v1198_v10, %v484_v51  ;;  %v485_v58 = vmul.f32 %v1216_v44, %v484_v51  ;;  %v496_v40 = vand.u32 2147483647, %v1287_v26  ;;  %vm494_vm12 = vmor %vm492_vm11, %vm493_vm10 }
 0x25c   :  { %843 = vrcp.f32 %v1330_v32  ;;  %v506_v59 = vmul.f32 %v840_v62, %v505_v47  ;;  %v536_v41 = vmul.f32 %v842_v15, %v1314_v63  ;;  %v514_v55 = vand.u32 2147483648, %v1295_v52 }
 0x25d   :  { %v495_v16 = vsel %vm494_vm12, %v1297_v4, %v491_v14  ;;  %vm497_vm13 = vcmp.eq.f32.partialorder %v496_v40, 8.507059e+37  ;;  %v512_v4 = vand.u32 2147483647, %v1295_v52  ;;  %vm541_vm10 = vweird.f32 %v842_v15 }
 0x25e   :  { %v500_v42 = vsel %vm497_vm13, %v499_v24, %v495_v16  ;;  %v507_v10 = vadd.f32 %v840_v62, %v506_v59  ;;  %v537_v44 = vsub.f32 1.0, %v536_v41  ;;  %v515_v49 = vor.u32 1.1754944e-38, %v514_v55 }
 0x25f   :  { %584 = vperm.xlu2 %793, %v470_v54   ;;  %579 = vperm.xlu0 %794, %v469_v36   ;;  %v502_v26 = vmul.f32 %v1211_v22, %v500_v42  ;;  %v501_v6 = vmul.f32 %v1227_v31, %v500_v42  ;;  %vm513_vm9 = vcmp.eq.f32.partialorder %v512_v4, 8.507059e+37  ;;  %v546_v22 = vand.u32 2147483648, %v1314_v63 }
 0x260   :  { %v511_v60 = vsel %vm510_vm1, %v840_v62, %v507_v10  ;;  %v538_v48 = vmul.f32 %v842_v15, %v537_v44  ;;  %vm540_vm11 = vweird.f32 %v1314_v63  ;;  %v544_v52 = vand.u32 2147483647, %v1314_v63 }
 0x261   :  { %v516_v33 = vsel %vm513_vm9, %v515_v49, %v511_v60  ;;  %vm542_vm12 = vmor %vm540_vm11, %vm541_vm10  ;;  %v547_v57 = vor.u32 1.1754944e-38, %v546_v22  ;;  %v562_v56 = vand.u32 2147483648, %v1330_v32  ;;  %vm556_vm15 = vweird.f32 %v1330_v32 }
 0x262   :  { %v844_v9 = vpop.eup %843  ;;  %v539_v53 = vadd.f32 %v842_v15, %v538_v48  ;;  %v518_v31 = vmul.f32 %v1235_v34, %v516_v33  ;;  %v517_v54 = vmul.f32 %v1200_v13, %v516_v33  ;;  %vm545_vm13 = vcmp.eq.f32.partialorder %v544_v52, 8.507059e+37 }
 0x263   :  { %v552_v5 = vmul.f32 %v844_v9, %v1330_v32  ;;  %vm557_vm14 = vweird.f32 %v844_v9  ;;  %v534_v13 = vmul.f32 %v1213_v25, %v1311_v18  ;;  %v560_v63 = vand.u32 2147483647, %v1330_v32 }
 0x264   :  { %v543_v62 = vsel %vm542_vm12, %v842_v15, %v539_v53  ;;  %vm558_vm1 = vmor %vm556_vm15, %vm557_vm14  ;;  %v563_v51 = vor.u32 1.1754944e-38, %v562_v56 }
 0x265   :  { %v553_v61 = vsub.f32 1.0, %v552_v5  ;;  %v548_v1 = vsel %vm545_vm13, %v547_v57, %v543_v62  ;;  %vm561_vm9 = vcmp.eq.f32.partialorder %v560_v63, 8.507059e+37 }
 0x266   :  { %v549_v34 = vmul.f32 %v1239_v43, %v548_v1  ;;  %v550_v15 = vmul.f32 %v1232_v35, %v548_v1 }
 0x267   :  { %594 = vperm.xlu2 %793, %v486_v17   ;;  %589 = vperm.xlu0 %794, %v485_v58   ;;  %v554_v36 = vmul.f32 %v844_v9, %v553_v61 }
 0x269   :  { %v555_v11 = vadd.f32 %v844_v9, %v554_v36 }
 0x26b   :  { %v559_v50 = vsel %vm558_vm1, %v844_v9, %v555_v11 }
 0x26c   :  { %v564_v14 = vsel %vm561_vm9, %v563_v51, %v559_v50 }
 0x26d   :  { %v565_v47 = vmul.f32 %v1224_v27, %v564_v14  ;;  %v566_v43 = vmul.f32 %v1242_v45, %v564_v14 }
 0x26f   :  { %604 = vperm.xlu2 %793, %v502_v26   ;;  %599 = vperm.xlu0 %794, %v501_v6  }
 0x277   :  { %614 = vperm.xlu2 %793, %v518_v31   ;;  %609 = vperm.xlu0 %794, %v517_v54  }
 0x27f   :  { %629 = vperm.xlu2 %793, %v549_v34   ;;  %624 = vperm.xlu0 %794, %v534_v13  }
 0x287   :  { %639 = vperm.xlu2 %793, %v565_v47   ;;  %634 = vperm.xlu0 %794, %v550_v15  }
 0x28f   :  { %644 = vperm.xlu0 %794, %v566_v43  }
 0x2b1   :  { %v575_v25 = vpop.permute.xlu2 %574 }
 0x2b2   :  { %v648_v55 = vmul.f32 %v575_v25, %v998_v12 }
 0x2b4   :  { %v664_v60 = vsel %vm81_vm0, %v648_v55, 0.0 }
 0x2b9   :  { %v585_v32 = vpop.permute.xlu2 %584 }
 0x2ba   :  { %v650_v41 = vmul.f32 %v585_v32, %v993_v8 }
 0x2bc   :  { %v673_v8 = vsel %vm81_vm0, %v650_v41, 0.0 }
 0x2c1   :  { %v595_v23 = vpop.permute.xlu2 %594 }
 0x2c2   :  { %v652_v10 = vmul.f32 %v595_v23, %v991_v7 }
 0x2c9   :  { %v570_v18 = vpop.permute.xlu0 %569  ;;  %v605_v17 = vpop.permute.xlu2 %604 }
 0x2ca   :  { %v647_v24 = vmul.f32 %v570_v18, %v986_v3  ;;  %v654_v26 = vmul.f32 %v605_v17, %v1006_v19 }
 0x2cc   :  { %v620_v44 = vpop.permute.xlu1 %619 }
 0x2cd   :  { %v657_v3 = vmul.f32 %v620_v44, %v1018_v28 }
 0x2cf   :  { %v708_v61 = vsel %vm81_vm0, %v657_v3, 0.0 }
 0x2d1   :  { %v580_v27 = vpop.permute.xlu0 %579  ;;  %v615_v40 = vpop.permute.xlu2 %614 }
 0x2d2   :  { %v649_v16 = vmul.f32 %v580_v27, %v984_v2  ;;  %v656_v2 = vmul.f32 %v615_v40, %v1022_v30  ;;  %v691_v30 = vsel %vm81_vm0, %v654_v26, 0.0 }
 0x2d4   :  { %v672_v6 = vsel %vm81_vm0, %v649_v16, 0.0  ;;  %v700_v28 = vsel %vm81_vm0, %v656_v2, 0.0 }
 0x2d5   :  { %v674_v4 = vadd.f32 %v673_v8, %v672_v6 }
 0x2d7   :  { %v675_v54 = vrot.slane %v674_v4, 4 }
 0x2d9   :  { %v590_v35 = vpop.permute.xlu0 %589  ;;  %v630_v33 = vpop.permute.xlu2 %629  ;;  %v676_v56 = vadd.f32 %v675_v54, %v674_v4 }
 0x2da   :  { %v651_v59 = vmul.f32 %v590_v35, %v982_v0  ;;  %v659_v1 = vmul.f32 %v630_v33, %v1034_v39 }
 0x2db   :  { %v677_v43 = vrot.slane %v676_v56, 2 }
 0x2dc   :  { %v681_v0 = vsel %vm81_vm0, %v651_v59, 0.0  ;;  %v717_v14 = vsel %vm81_vm0, %v659_v1, 0.0 }
 0x2dd   :  { %v678_v40 = vadd.f32 %v677_v43, %v676_v56 }
 0x2df   :  { %v679_v26 = vrot.slane %v678_v40, 1 }
 0x2e1   :  { %v600_v58 = vpop.permute.xlu0 %599  ;;  %v640_v25 = vpop.permute.xlu2 %639 }
 0x2e2   :  { %v653_v42 = vmul.f32 %v600_v58, %v1010_v21  ;;  %v663_v21 = vsel %vm81_vm0, %v647_v24, 0.0  ;;  %v661_v17 = vmul.f32 %v640_v25, %v1032_v38 }
 0x2e3   :  { %v665_v49 = vadd.f32 %v664_v60, %v663_v21 }
 0x2e4   :  { %v690_v7 = vsel %vm81_vm0, %v653_v42, 0.0  ;;  %v726_v44 = vsel %vm81_vm0, %v661_v17, 0.0 }
 0x2e5   :  { %v692_v53 = vadd.f32 %v691_v30, %v690_v7  ;;  %v666_v36 = vrot.slane %v665_v49, 4 }
 0x2e7   :  { %v693_v57 = vrot.slane %v692_v53, 4  ;;  %v667_v50 = vadd.f32 %v666_v36, %v665_v49 }
 0x2e9   :  { %v610_v45 = vpop.permute.xlu0 %609  ;;  %v694_v51 = vadd.f32 %v693_v57, %v692_v53  ;;  %v668_v39 = vrot.slane %v667_v50, 2 }
 0x2ea   :  { %v655_v9 = vmul.f32 %v610_v45, %v1008_v20  ;;  %v682_v20 = vsel %vm81_vm0, %v652_v10, 0.0 }
 0x2eb   :  { %v683_v48 = vadd.f32 %v682_v20, %v681_v0  ;;  %v695_v23 = vrot.slane %v694_v51, 2  ;;  %v669_v24 = vadd.f32 %v668_v39, %v667_v50  ;;  %v680_v20 = vadd.f32 %v679_v26, %v678_v40 }
 0x2ec   :  { %v699_v12 = vsel %vm81_vm0, %v655_v9, 0.0 }
 0x2ed   :  { %v701_v22 = vadd.f32 %v700_v28, %v699_v12  ;;  %v684_v62 = vrot.slane %v683_v48, 4  ;;  %v696_v42 = vadd.f32 %v695_v23, %v694_v51  ;;  %v670_v8 = vrot.slane %v669_v24, 1 }
 0x2ef   :  { %v702_v11 = vrot.slane %v701_v22, 4  ;;  %v685_v13 = vadd.f32 %v684_v62, %v683_v48  ;;  %v697_v3 = vrot.slane %v696_v42, 1  ;;  %v671_v60 = vadd.f32 %v670_v8, %v669_v24 }
 0x2f1   :  { %v625_v19 = vpop.permute.xlu0 %624  ;;  %v703_v47 = vadd.f32 %v702_v11, %v701_v22  ;;  %v686_v27 = vrot.slane %v685_v13, 2  ;;  %v698_v30 = vadd.f32 %v697_v3, %v696_v42  ;;  %v743_v49 = vsel %vm174_vm2, %v680_v20, %v671_v60 }
 0x2f2   :  { %v658_v5 = vmul.f32 %v625_v19, %v1020_v29 }
 0x2f3   :  { %v704_v58 = vrot.slane %v703_v47, 2  ;;  %v687_v59 = vadd.f32 %v686_v27, %v685_v13 }
 0x2f4   :  { %v709_v31 = vsel %vm81_vm0, %v658_v5, 0.0 }
 0x2f5   :  { %v710_v52 = vadd.f32 %v709_v31, %v708_v61  ;;  %v705_v9 = vadd.f32 %v704_v58, %v703_v47  ;;  %v688_v38 = vrot.slane %v687_v59, 1 }
 0x2f7   :  { %v711_v29 = vrot.slane %v710_v52, 4  ;;  %v706_v7 = vrot.slane %v705_v9, 1  ;;  %v689_v12 = vadd.f32 %v688_v38, %v687_v59 }
 0x2f9   :  { %v635_v34 = vpop.permute.xlu0 %634  ;;  %v712_v18 = vadd.f32 %v711_v29, %v710_v52  ;;  %v707_v5 = vadd.f32 %v706_v7, %v705_v9  ;;  %v744_v53 = vsel %vm176_vm3, %v689_v12, %v743_v49 }
 0x2fa   :  { %v660_v63 = vmul.f32 %v635_v34, %v1030_v37  ;;  %v745_v22 = vsel %vm178_vm4, %v698_v30, %v744_v53 }
 0x2fb   :  { %v713_v37 = vrot.slane %v712_v18, 2  ;;  %v746_v54 = vsel %vm180_vm5, %v707_v5, %v745_v22 }
 0x2fc   :  { %v718_v15 = vsel %vm81_vm0, %v660_v63, 0.0 }
 0x2fd   :  { %v719_v32 = vadd.f32 %v718_v15, %v717_v14  ;;  %v714_v6 = vadd.f32 %v713_v37, %v712_v18 }
 0x2ff   :  { %v720_v35 = vrot.slane %v719_v32, 4  ;;  %v715_v4 = vrot.slane %v714_v6, 1 }
 0x301   :  { %v721_v45 = vadd.f32 %v720_v35, %v719_v32  ;;  %v645_v16 = vpop.permute.xlu0 %644  ;;  %v716_v28 = vadd.f32 %v715_v4, %v714_v6 }
 0x302   :  { %v662_v41 = vmul.f32 %v645_v16, %v1042_v46 }
 0x303   :  { %v722_v10 = vrot.slane %v721_v45, 2  ;;  %v747_v62 = vsel %vm182_vm6, %v716_v28, %v746_v54 }
 0x304   :  { %v727_v55 = vsel %vm81_vm0, %v662_v41, 0.0 }
 0x305   :  { %v728_v2 = vadd.f32 %v727_v55, %v726_v44  ;;  %v723_v0 = vadd.f32 %v722_v10, %v721_v45 }
 0x307   :  { %v729_v21 = vrot.slane %v728_v2, 4  ;;  %v724_v19 = vrot.slane %v723_v0, 1 }
 0x309   :  { %v730_v46 = vadd.f32 %v729_v21, %v728_v2  ;;  %v725_v61 = vadd.f32 %v724_v19, %v723_v0 }
 0x30b   :  { %v731_v48 = vrot.slane %v730_v46, 2  ;;  %v748_v36 = vsel %vm184_vm7, %v725_v61, %v747_v62 }
 0x30d   :  { %v732_v33 = vadd.f32 %v731_v48, %v730_v46 }
 0x30f   :  { %v733_v31 = vrot.slane %v732_v33, 1 }
 0x311   :  { %v734_v52 = vadd.f32 %v733_v31, %v732_v33 }
 0x313   :  { %v749_v57 = vsel %vm186_vm8, %v734_v52, %v748_v36 }
 0x314   :  { %751 = vst.msk [vmem:[#allocation7] sm:$0xff] %vm81_vm0, %v749_v57 }
 0x315   :  { %762 = dma.vmem_to_hbm [thread:$0]  %s758_s27, 128, %s760_s30, [#allocation4]  }
 0x316   :  { %945 = dma.done.wait [#allocation4], 128  }
 0x317   :  { %946 = vsyncadd [#allocation4], 4294967168 }
 0x318   :  { %947 = dma.done.wait [#allocation9], 128  }
 0x319   :  { %948 = vsyncadd [#allocation9], 4294967168 }
 0x31a   :  { %782 = vsyncpa [#allocation3], 1 }
 0x31b   :  { %783 = vsyncpa [#allocation6], 1 }
 0x31c   :  { %784 = vsyncpa [#allocation4], 1 }
 0x31d   :  { %785 = vsyncpa [#allocation9], 1 }

</bundles_post_ra>
